<compile_context>
chip_gen: v7x
topology: tpu7x:2x2x1
jax: 0.10.0
libtpu: 0.0.40
codegen_flags: <defaults>
</compile_context>

<pallas_src>
import functools

import jax
import jax.numpy as jnp
from jax.experimental import pallas as pl
from jax.experimental.pallas import tpu as pltpu


# ---------------------------------------------------------------------------
# Generation-aware sizing
# ---------------------------------------------------------------------------

def _vmem_capacity_bytes() -> int:
    """Physical VMEM per TensorCore (v5e/v6e: 128 MiB, v7x: 64 MiB)."""
    try:
        return int(pltpu.get_tpu_info().vmem_capacity_bytes)
    except Exception:
        return 64 * 1024 * 1024  # conservative default (v7x-sized)


def _gen_params():
    """(max_block_elems, max_tile_rows, vmem_limit_bytes) per chip generation."""
    cap = _vmem_capacity_bytes()
    if cap >= 100 * 1024 * 1024:
        # v5e / v6e: 128 MiB physical VMEM -> bigger blocks amortize the
        # ~0.35us per-grid-step overhead; live set (2x input block + ~3 f32
        # full-tile temps) stays well under the 64 MiB scoped limit.
        return 2 * 1024 * 1024, 16384, 64 * 1024 * 1024
    # v7x: only 64 MiB VMEM per TensorCore; keep blocks ~4 MiB so the
    # double-buffered input plus the f32 temps (~5-6x block bytes) fit.
    return 1 * 1024 * 1024, 8192, 44 * 1024 * 1024


def _sublane_granule(dtype) -> int:
    itemsize = jnp.dtype(dtype).itemsize
    return max(8, 32 // max(1, itemsize))  # f32: 8, bf16: 16, int8/fp8: 32


def _round_up(x: int, m: int) -> int:
    return ((x + m - 1) // m) * m


def _round_down(x: int, m: int) -> int:
    return max(m, (x // m) * m)


def _pick_tile(total: int, cap: int, granule: int, min_tiles: int) -> int:
    """Largest multiple-of-`granule` tile <= cap giving >= min_tiles grid
    steps when possible. Ragged tails are masked in-kernel, so the tile does
    not need to divide `total`."""
    if total <= granule:
        return total                        # full extent (may be < granule)
    cap = _round_down(cap, granule)
    n = max(min_tiles, pl.cdiv(total, cap))
    tile = _round_up(pl.cdiv(total, n), granule)
    return min(tile, cap, _round_down(total, granule))


# ---------------------------------------------------------------------------
# Kernels
# ---------------------------------------------------------------------------

def _hloss_rows_kernel(x_ref, o_ref, *, n_rows, tile_rows):
    """(tile_rows, C) block; softmax/entropy over the last (lane/class) axis.

    Writes this tile's masked partial entropy sum broadcast into a
    layout-aligned (1, 8, 128) output tile; the wrapper reads [..., 0, 0].
    """
    xb = x_ref[...]                                        # (tile_rows, C), input dtype
    m = jnp.max(xb, axis=-1, keepdims=True)                # max in input dtype (order-preserving)
    z = xb.astype(jnp.float32) - m.astype(jnp.float32)
    ez = jnp.exp(z)
    s = jnp.sum(ez, axis=-1, keepdims=True)                # (tile_rows, 1)
    szz = jnp.sum(ez * z, axis=-1, keepdims=True)          # (tile_rows, 1)
    ent = jnp.log(s) - szz / s                             # per-row entropy
    row0 = pl.program_id(0) * tile_rows
    rid = jax.lax.broadcasted_iota(jnp.int32, ent.shape, 0) + row0
    ent = jnp.where(rid < n_rows, ent, 0.0)                # mask ragged tail rows
    o_ref[...] = jnp.full(o_ref.shape, jnp.sum(ent), dtype=jnp.float32)


def _hloss_chan_kernel(x_ref, o_ref, *, n_cols, tile_cols):
    """(1, C, tile_cols) block; class axis C on the sublane axis, flattened
    batch/spatial positions on the 128-wide lane axis (no transpose needed
    for NCHW inputs, dense lanes even for tiny C)."""
    xb = x_ref[...]                                        # (1, C, tile_cols), input dtype
    m = jnp.max(xb, axis=1, keepdims=True)                 # (1, 1, tile_cols)
    z = xb.astype(jnp.float32) - m.astype(jnp.float32)
    ez = jnp.exp(z)
    s = jnp.sum(ez, axis=1, keepdims=True)                 # (1, 1, tile_cols)
    szz = jnp.sum(ez * z, axis=1, keepdims=True)           # (1, 1, tile_cols)
    ent = jnp.log(s) - szz / s                             # per-position entropy
    col0 = pl.program_id(1) * tile_cols
    cid = jax.lax.broadcasted_iota(jnp.int32, ent.shape, 2) + col0
    ent = jnp.where(cid < n_cols, ent, 0.0)                # mask ragged tail columns
    o_ref[...] = jnp.full(o_ref.shape, jnp.sum(ent), dtype=jnp.float32)


# ---------------------------------------------------------------------------
# Wrapper
# ---------------------------------------------------------------------------

def hloss(x: jax.Array, *, tile: int | None = None) -> jax.Array:
    """Entropy loss: -sum(softmax(x, axis=1) * log_softmax(x, axis=1)).

    Accepts any rank >= 2 input; softmax axis is axis 1 (PyTorch dim=1).
    Returns a scalar float32.
    """
    assert x.ndim >= 2, "softmax over dim=1 needs rank >= 2"
    block_elems, row_cap, vmem_limit = _gen_params()

    # TODO(synk): for vocab-scale C that cannot fit a full softmax group in a
    # single VMEM block, add an online (running max / running sum) reduction
    # over a second, "arbitrary" grid axis instead of one-shot blocks.

    if x.ndim == 2:
        # ---- class axis on the lane (last) axis, row-tiled over B ----
        B, C = x.shape
        granule = _sublane_granule(x.dtype)
        cap = min(row_cap, max(granule, block_elems // max(1, C)))
        tile_b = int(tile) if tile is not None else _pick_tile(B, cap, granule, min_tiles=2)
        n_tiles = pl.cdiv(B, tile_b)

        partials = pl.pallas_call(
            functools.partial(_hloss_rows_kernel, n_rows=B, tile_rows=tile_b),
            out_shape=jax.ShapeDtypeStruct((n_tiles, 8, 128), jnp.float32),
            grid_spec=pltpu.PrefetchScalarGridSpec(
                num_scalar_prefetch=0,
                grid=(n_tiles,),
                in_specs=[pl.BlockSpec((tile_b, C), lambda i: (i, 0))],
                out_specs=pl.BlockSpec((1, 8, 128), lambda i: (i, 0, 0)),
            ),
            compiler_params=pltpu.CompilerParams(
                dimension_semantics=("parallel",),
                vmem_limit_bytes=vmem_limit,
            ),
        )(x)
        return jnp.sum(partials[:, 0, 0])

    # ---- rank >= 3: NC[spatial...] -> (N, C, HW) is a free contiguous view ----
    N, C = x.shape[0], x.shape[1]
    HW = 1
    for d in x.shape[2:]:
        HW *= int(d)
    x3 = x.reshape(N, C, HW)

    cap = max(128, block_elems // max(1, C))
    min_tiles = 2 if N == 1 else 1          # keep >= 2 grid steps on v7x
    tile_hw = int(tile) if tile is not None else _pick_tile(HW, cap, 128, min_tiles=min_tiles)
    n_hw = pl.cdiv(HW, tile_hw)

    partials = pl.pallas_call(
        functools.partial(_hloss_chan_kernel, n_cols=HW, tile_cols=tile_hw),
        out_shape=jax.ShapeDtypeStruct((N, n_hw, 8, 128), jnp.float32),
        grid_spec=pltpu.PrefetchScalarGridSpec(
            num_scalar_prefetch=0,
            grid=(N, n_hw),
            in_specs=[pl.BlockSpec((1, C, tile_hw), lambda n, h: (n, 0, h))],
            out_specs=pl.BlockSpec((1, 1, 8, 128), lambda n, h: (n, h, 0, 0)),
        ),
        compiler_params=pltpu.CompilerParams(
            dimension_semantics=("parallel", "parallel"),
            vmem_limit_bytes=vmem_limit,
        ),
    )(x3)
    return jnp.sum(partials[:, :, 0, 0])


# ---------------------------------------------------------------------------
# Reference + tests
# ---------------------------------------------------------------------------

def _hloss_ref(x: jax.Array) -> jax.Array:
    xf = x.astype(jnp.float32)
    p = jax.nn.softmax(xf, axis=1)
    logp = jax.nn.log_softmax(xf, axis=1)
    return -jnp.sum(p * logp)


if __name__ == "__main__":
    key = jax.random.PRNGKey(0)
    k1, k2, k3, k4 = jax.random.split(key, 4)

    # 1) NCHW conv-style input, softmax over dim=1 (channels) — the spec shape.
    #    Uses the transpose-free sublane-class layout (C=4, HW=256).
    x4d = jax.random.normal(k1, (2, 4, 16, 16), dtype=jnp.float32)
    got = jax.block_until_ready(hloss(x4d))
    ref = jax.block_until_ready(_hloss_ref(x4d))
    assert jnp.allclose(got, ref, rtol=1e-4, atol=1e-3), (got, ref)

    # 2) NCHW with ragged spatial extent (HW=150 -> two 128-wide lane tiles,
    #    masked tail) to exercise the in-kernel column mask.
    x4r = jax.random.normal(k4, (2, 4, 10, 15), dtype=jnp.float32)
    got = jax.block_until_ready(hloss(x4r))
    ref = jax.block_until_ready(_hloss_ref(x4r))
    assert jnp.allclose(got, ref, rtol=1e-4, atol=1e-3), (got, ref)

    # 3) 2-D logits with a forced small row tile: multi-tile parallel partials.
    x2d = jax.random.normal(k2, (512, 128), dtype=jnp.float32)
    got = jax.block_until_ready(hloss(x2d, tile=64))
    ref = jax.block_until_ready(_hloss_ref(x2d))
    assert jnp.allclose(got, ref, rtol=1e-4, atol=1e-3), (got, ref)

    # 4) bf16 input with a ragged row count: exercises the pad-free masked
    #    tail (bf16 stays bf16 in HBM; only the subtraction upcasts to f32).
    xbf = jax.random.normal(k3, (100, 96), dtype=jnp.bfloat16)
    got = jax.block_until_ready(hloss(xbf, tile=32))
    ref = jax.block_until_ready(_hloss_ref(xbf))
    assert jnp.allclose(got, ref, rtol=1e-3, atol=1e-2), (got, ref)

    print("KERNEL_OK")
</pallas_src>

<mosaic_0001>
module attributes {stable_mosaic.version = 11 : i64} {
  func.func @_hloss_chan_kernel(%arg0: i32, %arg1: i32, %arg2: memref<1x4x256xf32, #tpu.memory_space<vmem>>, %arg3: memref<1x1x8x128xf32, #tpu.memory_space<vmem>>) attributes {dimension_semantics = [#tpu.dimension_semantics<parallel>, #tpu.dimension_semantics<parallel>], iteration_bounds = array<i64: 2, 1>, scalar_prefetch = 0 : i64, scratch_operands = 0 : i64, tpu.core_type = #tpu.core_type<tc>, window_params = [{transform_indices = @transform_0, window_bounds = array<i64: 1, 4, 256>}, {transform_indices = @transform_1, window_bounds = array<i64: 1, 1, 8, 128>}]} {
    %c0 = arith.constant 0 : index
    %c0_0 = arith.constant 0 : index
    %c0_1 = arith.constant 0 : index
    %0 = vector.load %arg2[%c0, %c0_0, %c0_1] : memref<1x4x256xf32, #tpu.memory_space<vmem>>, vector<1x4x256xf32>
    %cst = arith.constant dense<0xFF800000> : vector<1x256xf32>
    %1 = vector.multi_reduction <maximumf>, %0, %cst [1] : vector<1x4x256xf32> to vector<1x256xf32>
    %2 = vector.shape_cast %1 : vector<1x256xf32> to vector<1x1x256xf32>
    %3 = vector.broadcast %2 : vector<1x1x256xf32> to vector<1x4x256xf32>
    %4 = arith.subf %0, %3 : vector<1x4x256xf32>
    %5 = math.exp %4 : vector<1x4x256xf32>
    %cst_2 = arith.constant dense<0.000000e+00> : vector<1x256xf32>
    %6 = vector.multi_reduction <add>, %5, %cst_2 [1] : vector<1x4x256xf32> to vector<1x256xf32>
    %7 = vector.shape_cast %6 : vector<1x256xf32> to vector<1x1x256xf32>
    %8 = arith.mulf %5, %4 : vector<1x4x256xf32>
    %cst_3 = arith.constant dense<0.000000e+00> : vector<1x256xf32>
    %9 = vector.multi_reduction <add>, %8, %cst_3 [1] : vector<1x4x256xf32> to vector<1x256xf32>
    %10 = vector.shape_cast %9 : vector<1x256xf32> to vector<1x1x256xf32>
    %11 = math.log %7 : vector<1x1x256xf32>
    %12 = arith.divf %10, %7 : vector<1x1x256xf32>
    %13 = arith.subf %11, %12 : vector<1x1x256xf32>
    %c256_i32 = arith.constant 256 : i32
    %14 = arith.muli %arg1, %c256_i32 : i32
    %15 = tpu.iota {dimensions = array<i32: 2>} : vector<1x1x256xi32>
    %16 = vector.broadcast %14 : i32 to vector<1x1x256xi32>
    %17 = arith.addi %15, %16 : vector<1x1x256xi32>
    %c256_i32_4 = arith.constant 256 : i32
    %18 = vector.broadcast %c256_i32_4 : i32 to vector<1x1x256xi32>
    %19 = arith.cmpi slt, %17, %18 : vector<1x1x256xi32>
    %cst_5 = arith.constant 0.000000e+00 : f32
    %20 = vector.broadcast %cst_5 : f32 to vector<1x1x256xf32>
    %21 = arith.select %19, %13, %20 : vector<1x1x256xi1>, vector<1x1x256xf32>
    %22 = vector.shape_cast %21 : vector<1x1x256xf32> to vector<1x1x1x256xf32>
    %cst_6 = arith.constant dense<0.000000e+00> : vector<1xf32>
    %23 = vector.multi_reduction <add>, %22, %cst_6 [1, 2, 3] : vector<1x1x1x256xf32> to vector<1xf32>
    %24 = vector.shape_cast %23 : vector<1xf32> to vector<1x1x1x1xf32>
    %25 = vector.extract %24[0, 0, 0, 0] : f32 from vector<1x1x1x1xf32>
    %26 = vector.broadcast %25 : f32 to vector<1x1x8x128xf32>
    %c0_7 = arith.constant 0 : index
    %c0_8 = arith.constant 0 : index
    %c0_9 = arith.constant 0 : index
    %c0_10 = arith.constant 0 : index
    %27 = vector.load %arg3[%c0_7, %c0_8, %c0_9, %c0_10] : memref<1x1x8x128xf32, #tpu.memory_space<vmem>>, vector<1x1x8x128xf32>
    tpu.vector_store %arg3[%c0_7, %c0_8, %c0_9, %c0_10], %26 {strides = array<i32>} : memref<1x1x8x128xf32, #tpu.memory_space<vmem>>, vector<1x1x8x128xf32>,
    return
  }
  func.func @transform_0(%arg0: i32, %arg1: i32) -> (i32, i32, i32) {
    %c0_i32 = arith.constant 0 : i32
    %c0_i32_0 = arith.constant 0 : i32
    return %arg0, %c0_i32, %arg1 : i32, i32, i32
  }
  func.func @transform_1(%arg0: i32, %arg1: i32) -> (i32, i32, i32, i32) {
    %c0_i32 = arith.constant 0 : i32
    %c0_i32_0 = arith.constant 0 : i32
    %c0_i32_1 = arith.constant 0 : i32
    return %arg0, %arg1, %c0_i32, %c0_i32_0 : i32, i32, i32, i32
  }
}

</mosaic_0001>

<bundles_post_ra>
// kernel: tpu_custom_call.1
= control target key start
LH: loop header
LB: loop body
LE: loop exit
PB: predicated region body
PF: predicated region fallthrough
CT: control target
= control target key end

     0   :  { %6 = vsyncpa [#allocation3], 0  ;;  %s744_s0 = inlined_call_operand.hbm [shape: f32[2,4,256], index: 0, kind: input, shape index: {}]   ;;  %s745_s1 = inlined_call_operand.hbm [shape: f32[2,1,8,128], index: 1, kind: output, shape index: {}]  }
   0x1   :  { %8 = vsyncpa [#allocation3 + $0x1], 0 }
   0x2   :  { %9 = vsyncpa [#allocation4], 0 }
   0x3   :  { %11 = vsyncpa [#allocation4 + $0x1], 0  ;;  %s562_s6 = smov 0   ;;  %s564_s7 = smov 0  }
   0x4   :  { %s566_s8 = smov 0   ;;  %s568_s9 = smov 0  }
   0x5   :  { %s570_s10 = smov 0   ;;  %s572_s11 = smov 0  }
   0x6 LB: > { %s346_s12 = sadd.s32 4294967295, %s548_s11   ;;  %s347_s13 = sadd.s32 4294967294, %s548_s11   ;;  %s548_s11 = sphi %s572_s11, %s17_s11   ;;  %s544_s10 = sphi %s570_s10, %s761_s10   ;;  %s540_s9 = sphi %s568_s9, %s760_s9   ;;  %s536_s8 = sphi %s566_s8, %s759_s8   ;;  %s532_s7 = sphi %s564_s7, %s758_s7   ;;  %s528_s6 = sphi %s562_s6, %s757_s6  }
   0x7   : > { %s29_s14 = sadd.s32 1, %s544_s10  ;;  %s38_s15 = sadd.s32 1, %s536_s8 }
   0x8   : > { %p31_p0 = scmp.ge.s32.totalorder %s29_s14, 2  ;;  %p45_p1 = scmp.ne.s32.totalorder %s536_s8, %s532_s7 }
   0x9   : > { %p46_p2 = scmp.eq.s32.totalorder %s548_s11, 0  ;;  %p51_p3 = scmp.ne.s32.totalorder %s532_s7, %s528_s6 }
   0xa   : > { %s763_s14 = smov (%p31_p0, %s29_s14), 0  ;;  %p52_p5 = scmp.eq.s32.totalorder %s346_s12, 0 }
   0xb   : > { %p603_p4 = por %p46_p2, %p45_p1  ;;  %s33_s17 = ssub.s32 %s544_s10, %s763_s14 }
   0xc   : > { %p77_p6 = scmp.eq.s32.totalorder %s346_s12, 1  ;;  %p36_p7 = scmp.eq.s32.totalorder %s33_s17, 0 }
   0xd   : > { %p609_p8 = por %p52_p5, %p51_p3  ;;  %p83_p10 = scmp.eq.s32.totalorder %s347_s13, 1 }
   0xe   : > { %p613_p9 = por %p77_p6, %p45_p1  ;;  %p375_p13 = scmp.lt.s32.totalorder %s548_s11, 2 }
   0xf   : > { %s618_s20 = scalar_select %p36_p7, %s536_s8, %s38_s15  }
  0x10   : > { %s749_s19 = scalar_select %p613_p9, 1, 0 }
  0x11   : > { %p620_p11 = por %p83_p10, %p51_p3  ;;  %s103_s22 = sand.u32 1, %s536_s8  }
  0x12   : > { %s350_s23 = sshll.u32 %s103_s22, 3  ;;  %s360_s24 = sshll.u32 %s544_s10, 7 }
  0x13   : > { %s750_s21 = scalar_select %p620_p11, 1, 0 }
  0x14   : > { %s631_s27 = scalar_lea.hbm %s744_s0, %s360_s24  ;;  %s107_s28 = scalar_lea.vmem [#allocation2], %s350_s23 }
  0x15   : > { %s117_s29 = sshll.u32 %s107_s28, 4  ;;  %p637_p0 = pnand %p375_p13, %p603_p4  ;;  %s633_s29 = int_to_ptr.vmem [resolvable:$true] %s117_s29 }
  0x16   : > { %s104_s2 = scalar_lea.sflag [#allocation3], %s103_s22  ;;  %s436_s3 = scalar_lea.hbm %s631_s27, 128 }
  0x17   : > { %p437_p3 = scmp.ne.s32.totalorder %s631_s27, %s436_s3  ;;  %p438_p5 = pneg %p637_p0 }
  0x18   : > { %s441_s12 = scalar_lea.hbm %s744_s0, 256  ;;  %p442_p4 = scmp.lt.u32.totalorder %s631_s27, %s744_s0 }
  0x19   : > { %p439_p6 = pnand %p438_p5, %p437_p3  ;;  %p443_p10 = scmp.lt.u32.totalorder %s441_s12, %s436_s3 }
  0x1a   : > { %p445_p12 = scmp.lt.u32.totalorder %s436_s3, %s631_s27 }
  0x1b   : > { %p440_p7 = pneg %p439_p6  ;;  %p444_p13 = por %p443_p10, %p442_p4 }
  0x1d   : > { %p446_p1 = por %p445_p12, %p444_p13 }
  0x1f   : > { %p447_p2 = pnand %p446_p1, %p440_p7 }
  0x21   : > { %450 = shalt.err (!%p447_p2)
}
  0x22   : > { %s451_s16 = scalar_lea.vmem %s633_s29, 128  ;;  %s550_s17 = smov [#allocation2]  }
  0x23   : > { %p452_p3 = scmp.ne.s32.totalorder %s633_s29, %s451_s16  ;;  %s456_s22 = sshll.u32 %s550_s17, 4  ;;  %s457_s22 = int_to_ptr.vmem [resolvable:$false] %s456_s22 }
  0x24   : > { %s458_s23 = scalar_lea.vmem %s457_s22, 256  ;;  %p459_p9 = scmp.lt.s32.totalorder %s633_s29, %s457_s22 }
  0x25   : > { %p454_p6 = pnand %p452_p3, %p438_p5  ;;  %p460_p4 = scmp.lt.s32.totalorder %s458_s23, %s451_s16 }
  0x27   : > { %p455_p11 = pneg %p454_p6  ;;  %p461_p10 = por %p460_p4, %p459_p9 }
  0x29   : > { %p462_p12 = pnand %p461_p10, %p455_p11 }
  0x2b   : > { %465 = shalt.err (!%p462_p12)
}
  0x2c   : > { %370 = dma.hbm_to_vmem [thread:$0]  (!%p637_p0), %s631_s27, 128, %s633_s29, %s104_s2  }
  0x2d   : > { %p752_p1 = scmp.lt.s32.totalorder %s548_s11, 3  ;;  %p753_p2 = scmp.ge.s32.totalorder %s548_s11, 1 }
  0x2f   : > { %p123_p5 = pnand %p753_p2, %p752_p1 }
  0x30   : > { %s673_s24 = sand.u32 (!%p123_p5), 1, %s532_s7  }
  0x31   : > { %126 = sbr.rel (%p123_p5) target bundleno = 343 (0x157), region = 24  ;;  %s354_s25 = sshll.u32 (!%p123_p5), %s673_s24, 3 }
  0x32   : > { %s129_s26 = scalar_lea.sflag (!%p123_p5), [#allocation3], %s673_s24  ;;  %s132_s28 = scalar_lea.vmem (!%p123_p5), [#allocation2], %s354_s25 }
  0x38   : > { %519 = dma.done.wait (%p609_p8), %s129_s26, 128  }
  0x39   : > { %521 = vsyncadd (%p609_p8), %s129_s26, 4294967168  ;;  %vm156_vm0 = vcmask 1043456   ;;  %v152_v0 = vld [vmem:[%s132_s28] sm:$0xff]  ;;  %vm234_vm1 = vcmask 1040384   ;;  %s150_s18 = scalar_lea.vmem [#allocation5], %s354_s25  ;;  %s357_s29 = sshll.u32 %s540_s9, 7 }
  0x3a   : > { %v154_v1 = vcombine.high %v152_v0, %v152_v0  ;;  %v157_v2 = vsel %vm156_vm0, %v152_v0, -inf  ;;  %s264_s27 = sshll.u32 %s150_s18, 4  ;;  %s697_s4 = scalar_lea.hbm %s745_s1, %s357_s29  ;;  %s692_s27 = int_to_ptr.vmem [resolvable:$true] %s264_s27 }
  0x3b   : > { %v158_v3 = vrot.slane %v157_v2, 4  ;;  %s250_s5 = scalar_lea.sflag [#allocation4], %s673_s24  ;;  %s466_s12 = scalar_lea.vmem %s692_s27, 128 }
  0x3c   : > { %v164_v4 = vsel %vm156_vm0, %v154_v1, -inf  ;;  %p467_p8 = scmp.ne.s32.totalorder %s692_s27, %s466_s12  ;;  %p754_p9 = scmp.ne.s32.totalorder %s749_s19, 0 }
  0x3d   : > { %v159_v5 = vmax.f32 %v157_v2, %v158_v3  ;;  %v165_v6 = vrot.slane %v164_v4, 4  ;;  %s551_s9 = smov [#allocation5]  }
  0x3e   : > { %p468_p11 = pnand %p467_p8, %p754_p9  ;;  %s470_s13 = sshll.u32 %s551_s9, 4  ;;  %s471_s13 = int_to_ptr.vmem [resolvable:$false] %s470_s13 }
  0x3f   : > { %v160_v7 = vrot.slane %v159_v5, 2  ;;  %v166_v8 = vmax.f32 %v164_v4, %v165_v6  ;;  %s472_s15 = scalar_lea.vmem %s471_s13, 256  ;;  %p473_p7 = scmp.lt.s32.totalorder %s692_s27, %s471_s13 }
  0x40   : > { %p469_p0 = pneg %p468_p11  ;;  %p474_p13 = scmp.lt.s32.totalorder %s472_s15, %s466_s12 }
  0x41   : > { %v161_v9 = vmax.f32 %v159_v5, %v160_v7  ;;  %v167_v10 = vrot.slane %v166_v8, 2 }
  0x42   : > { %p475_p3 = por %p474_p13, %p473_p7 }
  0x43   : > { %v162_v11 = vrot.slane %v161_v9, 1  ;;  %v168_v12 = vmax.f32 %v166_v8, %v167_v10 }
  0x44   : > { %p476_p6 = pnand %p475_p3, %p469_p0 }
  0x45   : > { %v163_v13 = vmax.f32 %v161_v9, %v162_v11  ;;  %v169_v14 = vrot.slane %v168_v12, 1 }
  0x47   : > { %v170_v15 = vmax.f32 %v168_v12, %v169_v14 }
  0x49   : > { %v173_v16 = vcombine.low %v163_v13, %v170_v15 }
  0x4b   : > { %v175_v17 = vsub.f32 %v152_v0, %v173_v16 }
  0x4d   : > { %v176_v18 = vmul.f32 1.442695, %v175_v17 }
  0x4f   : > { %426 = vpow2.f32 %v176_v18 }
  0x59   : > { %v427_v19 = vpop.eup %426 }
  0x5a   : > { %v179_v20 = vcombine.high %v427_v19, %v427_v19  ;;  %v181_v21 = vsel %vm156_vm0, %v427_v19, 0.0  ;;  %v195_v22 = vmul.f32 %v427_v19, %v175_v17 }
  0x5b   : > { %v182_v23 = vrot.slane %v181_v21, 4 }
  0x5c   : > { %v188_v24 = vsel %vm156_vm0, %v179_v20, 0.0  ;;  %v197_v25 = vcombine.high %v195_v22, %v195_v22  ;;  %v199_v26 = vsel %vm156_vm0, %v195_v22, 0.0 }
  0x5d   : > { %v183_v27 = vadd.f32 %v182_v23, %v181_v21  ;;  %v189_v28 = vrot.slane %v188_v24, 4  ;;  %v200_v29 = vrot.slane %v199_v26, 4 }
  0x5e   : > { %v206_v30 = vsel %vm156_vm0, %v197_v25, 0.0 }
  0x5f   : > { %v184_v31 = vrot.slane %v183_v27, 2  ;;  %v190_v32 = vadd.f32 %v189_v28, %v188_v24  ;;  %v201_v33 = vadd.f32 %v200_v29, %v199_v26  ;;  %v207_v34 = vrot.slane %v206_v30, 4 }
  0x61   : > { %v185_v35 = vadd.f32 %v184_v31, %v183_v27  ;;  %v191_v36 = vrot.slane %v190_v32, 2  ;;  %v208_v37 = vadd.f32 %v207_v34, %v206_v30  ;;  %v202_v40 = vrot.slane %v201_v33, 2 }
  0x63   : > { %v186_v38 = vrot.slane %v185_v35, 1  ;;  %v192_v39 = vadd.f32 %v191_v36, %v190_v32  ;;  %v209_v43 = vrot.slane %v208_v37, 2  ;;  %v203_v45 = vadd.f32 %v202_v40, %v201_v33 }
  0x65   : > { %v187_v41 = vadd.f32 %v186_v38, %v185_v35  ;;  %v193_v42 = vrot.slane %v192_v39, 1  ;;  %v210_v46 = vadd.f32 %v209_v43, %v208_v37  ;;  %v204_v47 = vrot.slane %v203_v45, 1 }
  0x67   : > { %v194_v44 = vadd.f32 %v193_v42, %v192_v39  ;;  %428 = vlog2.f32 %v187_v41  ;;  %v211_v48 = vrot.slane %v210_v46, 1  ;;  %v205_v49 = vadd.f32 %v204_v47, %v203_v45 }
  0x68   : > { %430 = vrcp.f32 %v187_v41 }
  0x69   : > { %432 = vlog2.f32 %v194_v44  ;;  %v212_v51 = vadd.f32 %v211_v48, %v210_v46 }
  0x6a   : > { %434 = vrcp.f32 %v194_v44 }
  0x71   : > { %v429_v50 = vpop.eup %428 }
  0x72   : > { %v431_v52 = vpop.eup %430  ;;  %v214_v53 = vmul.f32 0.6931472, %v429_v50 }
  0x73   : > { %v433_v54 = vpop.eup %432  ;;  %v218_v55 = vmul.f32 %v431_v52, %v205_v49 }
  0x74   : > { %v435_v56 = vpop.eup %434  ;;  %v216_v57 = vmul.f32 0.6931472, %v433_v54 }
  0x75   : > { %v220_v58 = vmul.f32 %v435_v56, %v212_v51  ;;  %v221_v59 = vsub.f32 %v214_v53, %v218_v55 }
  0x77   : > { %v222_v60 = vsub.f32 %v216_v57, %v220_v58  ;;  %v235_v61 = vsel %vm234_vm1, %v221_v59, 0.0 }
  0x79   : > { %v236_v62 = vsel %vm234_vm1, %v222_v60, 0.0 }
  0x7a   : > { %v237_v63 = vadd.f32 %v236_v62, %v235_v61 }
  0x7c   : > { %238 = vadd.xlane.f32.xlu0 %v237_v63 }
 0x109   : > { %v239_v0 = vpop.xlane.xlu0 %238 }
 0x10a   : > { %v240_v1 = vrot.slane %v239_v0, 4 }
 0x10c   : > { %v241_v2 = vadd.f32 %v240_v1, %v239_v0 }
 0x10e   : > { %v242_v3 = vrot.slane %v241_v2, 2 }
 0x110   : > { %v243_v4 = vadd.f32 %v242_v3, %v241_v2 }
 0x112   : > { %v244_v5 = vrot.slane %v243_v4, 1 }
 0x114   : > { %v245_v6 = vadd.f32 %v244_v5, %v243_v4 }
 0x116   : > { %361 = vpush %v245_v6 }
 0x147   : > { %s362_s30 = spop %361 }
 0x148   : > { %v247_v7 = vstv %s362_s30 }
 0x149   : > { %248 = vst [vmem:[%s150_s18] sm:$0xff] %v247_v7 }
 0x14a   : > { %479 = shalt.err (!%p476_p6)
}
 0x14b   : > { %s480_s16 = scalar_lea.hbm %s697_s4, 128  ;;  %s484_s23 = scalar_lea.hbm %s745_s1, 256 }
 0x14c   : > { %p481_p4 = scmp.ne.s32.totalorder %s697_s4, %s480_s16  ;;  %p485_p1 = scmp.lt.u32.totalorder %s697_s4, %s745_s1 }
 0x14d   : > { %p486_p2 = scmp.lt.u32.totalorder %s484_s23, %s480_s16  ;;  %p488_p8 = scmp.lt.u32.totalorder %s480_s16, %s697_s4 }
 0x14e   : > { %p482_p10 = pnand %p481_p4, %p754_p9 }
 0x14f   : > { %p487_p5 = por %p486_p2, %p485_p1 }
 0x150   : > { %p483_p12 = pneg %p482_p10 }
 0x151   : > { %p489_p11 = por %p488_p8, %p487_p5 }
 0x153   : > { %p490_p0 = pnand %p489_p11, %p483_p12 }
 0x155   : > { %493 = shalt.err (!%p490_p0)
}
 0x156   : > { %365 = dma.vmem_to_hbm [thread:$0]  (%p754_p9), %s692_s27, 128, %s697_s4, %s250_s5  }
 0x157 PF: > { %s276_s26 = sand.u32 1, %s528_s6   ;;  %p755_p7 = scmp.ne.s32.totalorder %s750_s21, 0 }
 0x158   : > { %p756_p13 = scmp.ge.s32.totalorder %s548_s11, 2  ;;  %s277_s28 = scalar_lea.sflag [#allocation4], %s276_s26 }
 0x15a   : > { %p372_p3 = pnand %p756_p13, %p755_p7 }
 0x15c   : > { %523 = dma.done.wait (!%p372_p3), %s277_s28, 128  }
 0x15d   : > { %525 = vsyncadd (!%p372_p3), %s277_s28, 4294967168  ;;  %s17_s11 = sadd.s32 1, %s548_s11   ;;  %s757_s6 = smov %s532_s7 }
 0x15e   : > { %p14_p6 = scmp.ge.s32.totalorder %s17_s11, 4   ;;  %s758_s7 = smov %s536_s8 }
 0x15f   : > { %s759_s8 = smov %s618_s20  ;;  %s760_s9 = smov %s544_s10 }
 0x160   : > { %s761_s10 = smov %s763_s14  ;;  %16 = sbr.rel (!%p14_p6) target bundleno = 6 (0x6), region = 69 }
 0x167   :  { %282 = vsyncpa [#allocation3], 1 }
 0x168   :  { %284 = vsyncpa [#allocation3 + $0x1], 1 }
 0x169   :  { %285 = vsyncpa [#allocation4], 1 }
 0x16a   :  { %287 = vsyncpa [#allocation4 + $0x1], 1 }

</bundles_post_ra>
